<compile_context>
chip_gen: v6e
topology: v6e:2x2x1
jax: 0.10.0
libtpu: 0.0.40
codegen_flags: <defaults>
</compile_context>

<pallas_src>
import functools

import jax
import jax.numpy as jnp
from jax import lax
from jax.experimental import pallas as pl
from jax.experimental.pallas import tpu as pltpu

INF = 1e12          # constant.INFINITY_NUMBER
NEG_BIG = -1e9      # threshold fill used inside attention()

N_POS = 10          # len(constant.POS_TO_ID)      (synthetic)
N_NER = 10          # len(constant.NER_TO_ID)      (synthetic)
N_DEPREL = 10       # len(constant.DEPREL_TO_ID)   (synthetic)

# MXU operand dtype.  Accumulation is always f32 via preferred_element_type.
# Set to jnp.float32 for reference-exact validation.
MXU_DTYPE = jnp.bfloat16
VMEM_LIMIT = 48 * 1024 * 1024   # safe on v5e/v6e (128 MiB) and v7x (64 MiB/TC)


# --------------------------------------------------------------------------
# Pallas kernels
# --------------------------------------------------------------------------
def _linear_kernel(x_ref, w_ref, b_ref, o_ref, *, relu):
    y = jnp.dot(x_ref[...].astype(MXU_DTYPE), w_ref[...],
                preferred_element_type=jnp.float32) + b_ref[...]
    if relu:
        y = jnp.maximum(y, 0.0)
    o_ref[...] = y


def pallas_linear(x, wt, b, relu=False, block_m=512):
    """y = x @ wt + b.  x:[M,K]  wt:[K,N] (pre-transposed, MXU dtype)  b:[N] f32."""
    x = x.astype(jnp.float32)
    M, K = x.shape
    N = wt.shape[1]
    b2 = jnp.asarray(b, jnp.float32).reshape(1, N)
    bm = M if M <= block_m else block_m
    return pl.pallas_call(
        functools.partial(_linear_kernel, relu=relu),
        out_shape=jax.ShapeDtypeStruct((M, N), jnp.float32),
        grid=(pl.cdiv(M, bm),),
        in_specs=[pl.BlockSpec((bm, K), lambda i: (i, 0)),
                  pl.BlockSpec((K, N), lambda i: (0, 0)),
                  pl.BlockSpec((1, N), lambda i: (0, 0))],
        out_specs=pl.BlockSpec((bm, N), lambda i: (i, 0)),
        compiler_params=pltpu.CompilerParams(
            dimension_semantics=("parallel",),
            vmem_limit_bytes=VMEM_LIMIT),
    )(x, wt, b2)


def _mlp_chain_kernel(*refs, n_layers):
    """Fused Linear+ReLU stack on a VMEM-resident activation."""
    x_ref = refs[0]
    o_ref = refs[-1]
    h = x_ref[...]
    for i in range(n_layers):
        wt = refs[1 + 2 * i][...]
        b = refs[2 + 2 * i][...]
        h = jnp.dot(h.astype(MXU_DTYPE), wt,
                    preferred_element_type=jnp.float32) + b
        h = jnp.maximum(h, 0.0)
    o_ref[...] = h


def pallas_mlp_chain(x, layers, block_m=512):
    """Chain of (Linear+ReLU).  layers: list of (wt:[K,N] MXU dtype, b:[N] f32)."""
    x = x.astype(jnp.float32)
    M, K0 = x.shape
    bm = M if M <= block_m else block_m
    in_specs = [pl.BlockSpec((bm, K0), lambda i: (i, 0))]
    args = [x]
    for (wt, b) in layers:
        Kl, Nl = wt.shape
        in_specs.append(pl.BlockSpec((Kl, Nl), lambda i: (0, 0)))
        in_specs.append(pl.BlockSpec((1, Nl), lambda i: (0, 0)))
        args.append(wt)
        args.append(jnp.asarray(b, jnp.float32).reshape(1, Nl))
    n_out = layers[-1][0].shape[1]
    return pl.pallas_call(
        functools.partial(_mlp_chain_kernel, n_layers=len(layers)),
        out_shape=jax.ShapeDtypeStruct((M, n_out), jnp.float32),
        grid=(pl.cdiv(M, bm),),
        in_specs=in_specs,
        out_specs=pl.BlockSpec((bm, n_out), lambda i: (i, 0)),
        compiler_params=pltpu.CompilerParams(
            dimension_semantics=("parallel",),
            vmem_limit_bytes=VMEM_LIMIT),
    )(*args)


def _bmm_kernel(a_ref, b_ref, o_ref, *, trans_b):
    a = a_ref[0]
    b = b_ref[0]
    dims = (((1,), (1,)), ((), ())) if trans_b else (((1,), (0,)), ((), ()))
    o_ref[...] = lax.dot_general(a, b, dims,
                                 preferred_element_type=jnp.float32)[None]


def pallas_bmm(a, b, trans_b=False):
    """Batched matmul a:[NB,M,K] @ b:[NB,K,N] (or b:[NB,N,K] if trans_b)."""
    a = a.astype(jnp.float32)
    b = b.astype(jnp.float32)
    NB, M, K = a.shape
    N = b.shape[1] if trans_b else b.shape[2]
    b_block = (1, N, K) if trans_b else (1, K, N)
    return pl.pallas_call(
        functools.partial(_bmm_kernel, trans_b=trans_b),
        out_shape=jax.ShapeDtypeStruct((NB, M, N), jnp.float32),
        grid=(NB,),
        in_specs=[pl.BlockSpec((1, M, K), lambda i: (i, 0, 0)),
                  pl.BlockSpec(b_block, lambda i: (i, 0, 0))],
        out_specs=pl.BlockSpec((1, M, N), lambda i: (i, 0, 0)),
        compiler_params=pltpu.CompilerParams(dimension_semantics=("parallel",)),
    )(a, b)


def _aggcn_layer_kernel(x_ref, relq_ref, keep_ref, adjd_ref,
                        wq_ref, wk_ref, bk_ref, gw_ref, gb_ref, lw_ref, lb_ref,
                        o_ref, *, n_sub):
    """One fused AGGCN layer step for one (batch, head) grid point.

    Per step:  Q/K head projection -> Q.K^T -> masked z-score -> threshold ->
    weight-softmax attention adjacency -> n_sub GCN sub-layers; each sub-layer
    output is immediately contracted with its chunk of the final Linear weight
    and accumulated into the residual output block (which stays VMEM-resident
    across the heads axis).
    """
    x = x_ref[0]                          # [L, H] f32  (layer input / residual)
    keep = keep_ref[0]                    # [1, L]  key keep-mask (1 = keep)
    kb = keep > 0
    adjd = adjd_ref[0]                    # [L, L]  0/1 domain adjacency
    inv_dd = 1.0 / (jnp.sum(keep) + 0.01)  # per-batch denominator (mask.sum+0.01)
    x_c = x.astype(MXU_DTYPE)

    # residual + final-Linear bias: written once on the first head step
    @pl.when(pl.program_id(1) == 0)
    def _():
        o_ref[0] = x + lb_ref[...]

    # ---- per-head Q/K projection (rel-half of Q precomputed outside) ----
    q = jnp.dot(x_c, wq_ref[0], preferred_element_type=jnp.float32) + relq_ref[0, 0]
    k = jnp.dot(x_c, wk_ref[0], preferred_element_type=jnp.float32) + bk_ref[0]

    # scores = q @ k^T  (contract d_k, no materialized transpose)
    s = lax.dot_general(q.astype(MXU_DTYPE), k.astype(MXU_DTYPE),
                        (((1,), (1,)), ((), ())),
                        preferred_element_type=jnp.float32)          # [L, L]

    # ---- stdzscore over last dim (mymean / mystd with key mask) ----
    sm = jnp.where(kb, s, 0.0)
    mean = jnp.sum(sm, axis=-1, keepdims=True) * inv_dd
    sq = jnp.where(kb, (s - mean) ** 2, 0.0)
    var = jnp.sum(sq, axis=-1, keepdims=True) * inv_dd
    # TODO(synk): reference's global isnan fallback (use raw scores when a row
    # of kept scores is constant) is approximated by an eps-guarded rsqrt.
    res = jnp.where(kb, (s - mean) * lax.rsqrt(jnp.maximum(var, 1e-24)), 0.0)

    # ---- threshold + padding fills ----
    thresh = res < 0
    scores = jnp.where(thresh | (~kb), NEG_BIG, res)

    # ---- weightsoftmax ----
    e = jnp.exp(scores - jnp.max(scores, axis=-1, keepdims=True)) * adjd
    e = jnp.where(kb, e, 0.0) + 1e-10
    w = e * pl.reciprocal(jnp.sum(e, axis=-1, keepdims=True), approx=True)
    p_attn = jnp.where((~kb) | thresh | (adjd == 0), 0.0, w)         # [L, L]

    # ---- n_sub GCN sub-layers; final-Linear chunk folded into accumulator ----
    inv_denom = 1.0 / (jnp.sum(p_attn, axis=-1, keepdims=True) + 1.0)
    adj_c = p_attn.astype(MXU_DTYPE)

    acc = o_ref[0]                        # residual (+ previous heads' chunks)
    outs = x
    outs_c = x_c
    for l in range(n_sub):                # n_sub is small & static: unrolled
        ax = jnp.dot(adj_c, outs_c, preferred_element_type=jnp.float32)
        axw = jnp.dot((ax + outs).astype(MXU_DTYPE), gw_ref[0, l],
                      preferred_element_type=jnp.float32) + gb_ref[0, l]
        outs = jnp.maximum(axw * inv_denom, 0.0)
        outs_c = outs.astype(MXU_DTYPE)
        acc = acc + jnp.dot(outs_c, lw_ref[0, l],
                            preferred_element_type=jnp.float32)
    o_ref[0] = acc


def pallas_aggcn_layer(x, rel_q_heads, key_keep, adj_dom,
                       wq_heads, wk_heads, bk_heads, gcn_w, gcn_b2,
                       lin_w3, lin_b, *, heads, n_sub):
    """Fused MultiHeadAttention + MultiGraphConvLayer + final Linear + residual.

    x:[B,L,H] f32, rel_q_heads:[B,heads,L,d_k] f32, key_keep:[B,1,L] f32,
    adj_dom:[B,L,L] f32, wq/wk:[heads,H,d_k] MXU, bk:[heads,1,d_k] f32,
    gcn_w:[heads,n_sub,H,H] MXU, gcn_b2:[heads,n_sub,1,H] f32 (=2*b),
    lin_w3:[heads,n_sub,H,H] MXU, lin_b:[1,H] f32  ->  [B,L,H] f32.
    """
    B, L, H = x.shape
    d_k = H // heads
    return pl.pallas_call(
        functools.partial(_aggcn_layer_kernel, n_sub=n_sub),
        out_shape=jax.ShapeDtypeStruct((B, L, H), jnp.float32),
        grid=(B, heads),
        in_specs=[pl.BlockSpec((1, L, H), lambda b, h: (b, 0, 0)),
                  pl.BlockSpec((1, 1, L, d_k), lambda b, h: (b, h, 0, 0)),
                  pl.BlockSpec((1, 1, L), lambda b, h: (b, 0, 0)),
                  pl.BlockSpec((1, L, L), lambda b, h: (b, 0, 0)),
                  pl.BlockSpec((1, H, d_k), lambda b, h: (h, 0, 0)),
                  pl.BlockSpec((1, H, d_k), lambda b, h: (h, 0, 0)),
                  pl.BlockSpec((1, 1, d_k), lambda b, h: (h, 0, 0)),
                  pl.BlockSpec((1, n_sub, H, H), lambda b, h: (h, 0, 0, 0)),
                  pl.BlockSpec((1, n_sub, 1, H), lambda b, h: (h, 0, 0, 0)),
                  pl.BlockSpec((1, n_sub, H, H), lambda b, h: (h, 0, 0, 0)),
                  pl.BlockSpec((1, H), lambda b, h: (0, 0))],
        out_specs=pl.BlockSpec((1, L, H), lambda b, h: (b, 0, 0)),
        compiler_params=pltpu.CompilerParams(
            dimension_semantics=("parallel", "arbitrary"),
            vmem_limit_bytes=VMEM_LIMIT),
    )(x.astype(jnp.float32), rel_q_heads, key_keep, adj_dom,
      wq_heads, wk_heads, bk_heads, gcn_w, gcn_b2, lin_w3, lin_b)


def _masked_max_kernel(x_ref, keep_ref, o_ref):
    x = x_ref[0]          # [L, H]
    keep = keep_ref[0]    # [L, D]  (nonzero = keep, zero = fill with -INF)
    D = keep.shape[1]
    rows = []
    for d in range(D):    # D is small & static: unrolled
        kd = keep[:, d:d + 1]
        rows.append(jnp.max(jnp.where(kd > 0, x, -INF), axis=0, keepdims=True))
    o_ref[0] = jnp.concatenate(rows, axis=0)   # one dense [D, H] store


def pallas_masked_max(x, keep):
    """x:[B,L,H], keep:[B,L,D] -> out:[B,D,H], out[b,d,:]=max_l (keep ? x : -INF)."""
    x = x.astype(jnp.float32)
    keep = keep.astype(jnp.float32)
    B, L, H = x.shape
    D = keep.shape[2]
    return pl.pallas_call(
        _masked_max_kernel,
        out_shape=jax.ShapeDtypeStruct((B, D, H), jnp.float32),
        grid=(B,),
        in_specs=[pl.BlockSpec((1, L, H), lambda i: (i, 0, 0)),
                  pl.BlockSpec((1, L, D), lambda i: (i, 0, 0))],
        out_specs=pl.BlockSpec((1, D, H), lambda i: (i, 0, 0)),
        compiler_params=pltpu.CompilerParams(dimension_semantics=("parallel",)),
    )(x, keep)


# --------------------------------------------------------------------------
# Plain-JAX pieces (glue / ops with no clean Pallas equivalent)
# --------------------------------------------------------------------------
def lstm_last_hidden(x, seq_lens, lstm_params):
    """Forward-direction layer-0 LSTM final hidden state per sequence (== ht[0]
    of the packed bidirectional nn.LSTM in the reference)."""
    # TODO(synk): reason_layer (bidirectional packed nn.LSTM) implemented as a
    # plain-JAX lax.scan (only ht[0] is consumed by the forward pass), not Pallas.
    w_ih, w_hh, b_ih, b_hh = lstm_params
    B, T, _ = x.shape
    H = w_hh.shape[1]

    def step(carry, t):
        h, c = carry
        xt = x[:, t, :]
        gates = xt @ w_ih.T + b_ih + h @ w_hh.T + b_hh
        i, f, g, o = jnp.split(gates, 4, axis=-1)
        i = jax.nn.sigmoid(i)
        f = jax.nn.sigmoid(f)
        g = jnp.tanh(g)
        o = jax.nn.sigmoid(o)
        c_new = f * c + i * g
        h_new = o * jnp.tanh(c_new)
        valid = (t < seq_lens)[:, None]
        return (jnp.where(valid, h_new, h), jnp.where(valid, c_new, c)), None

    init = (jnp.zeros((B, H), jnp.float32), jnp.zeros((B, H), jnp.float32))
    (h, _), _ = jax.lax.scan(step, init, jnp.arange(T))
    return h


# --------------------------------------------------------------------------
# Model forward
# --------------------------------------------------------------------------
def gcn_relation_forward(params, inputs, opt):
    (words, _masks, pos, subj_mask, obj_mask, ner, _depmap, adj, _rel, _resrel,
     deprel, domain, sdp_domain, domain_subj, domain_obj, order_mm,
     _sdp_mask, batch_map) = inputs

    B, L = words.shape
    H = opt['hidden_dim']
    heads = opt['heads']
    d_k = H // heads

    # mask: tokens with no adjacency edges at all      [B, L] bool (True = masked)
    mask = (adj.sum(2) + adj.sum(1)) == 0

    # ================= AGGCN =================
    src_keep = (words != 0).astype(jnp.float32)[:, None, :]     # [B,1,L] key mask
    word_embs = params['emb'][words]
    rel_embs = params['rel_emb'][deprel]                        # [B,L,H]
    embs = jnp.concatenate(
        [word_embs, params['pos_emb'][pos], params['ner_emb'][ner]], axis=2)
    gcn_inputs = pallas_linear(
        embs.reshape(B * L, -1), params['W_G_wt'], params['W_G_b']).reshape(B, L, H)

    domain_f = domain.astype(jnp.float32)
    dm = pallas_bmm(domain_f, domain_f, trans_b=True)            # [B,L,L]
    eye = jnp.eye(L, dtype=bool)[None]
    domain_adj = jnp.where(eye, 0.0, (dm != 0).astype(jnp.float32))

    # rel-half of the shared Q projection, hoisted out of the layer loop
    rel_q = pallas_linear(rel_embs.reshape(B * L, H),
                          params['W_Qrel_wt'], params['W_Q_b'])
    rel_q_heads = rel_q.reshape(B, L, heads, d_k).transpose(0, 2, 1, 3)

    sublayer_counts = []
    for _ in range(opt['num_layers']):
        sublayer_counts += [opt['sublayer_first'], opt['sublayer_second']]

    outputs = gcn_inputs
    for layer_idx, n_sub in enumerate(sublayer_counts):
        lw = params['layers'][layer_idx]
        # fused: Q/K projection + attention + n_sub GCN chain + Linear + residual
        outputs = pallas_aggcn_layer(
            outputs, rel_q_heads, src_keep, domain_adj,
            params['W_Qx_heads'], params['W_K_heads'], params['W_K_bheads'],
            lw['gcn_w'], lw['gcn_b2'], lw['lin_w3'], lw['lin_b'],
            heads=heads, n_sub=n_sub)                            # [B,L,H]

    aspect_h = outputs                                          # [B,L,H]

    # ================= pooling & projections =================
    mask_keep = (~mask)[:, :, None]                             # True = keep
    subj_keep = mask_keep & (subj_mask == 0)[:, :, None]
    obj_keep = mask_keep & (obj_mask == 0)[:, :, None]
    keep3 = jnp.concatenate([mask_keep, subj_keep, obj_keep],
                            axis=-1).astype(jnp.float32)        # [B,L,3]
    pooled3 = pallas_masked_max(aspect_h, keep3)                 # [B,3,H]
    aspect_h_pool = pooled3[:, 0, :]
    aspect_h_pool = jnp.where(aspect_h_pool < -1e11, 0.0, aspect_h_pool)
    aspect_subj = pooled3[:, 1, :]
    aspect_obj = pooled3[:, 2, :]

    def relproj(x2d):                                           # fused Linear+ReLU stack
        return pallas_mlp_chain(x2d, params['relproj'])

    aspect_output = relproj(
        jnp.concatenate([aspect_h_pool, aspect_subj, aspect_obj], axis=-1))

    # three domain pools fused into one masked-max call
    Dm = domain.shape[-1]
    keep_dom = jnp.concatenate(
        [domain != 0, domain_subj != 0, domain_obj != 0],
        axis=-1).astype(jnp.float32)                            # [B,L,3*Dm]
    pooled_dom = pallas_masked_max(aspect_h, keep_dom)           # [B,3*Dm,H]
    rel_feat = jnp.concatenate(
        [pooled_dom[:, :Dm], pooled_dom[:, Dm:2 * Dm], pooled_dom[:, 2 * Dm:]],
        axis=-1)                                                # [B,Dm,3H]

    rel_in = relproj(rel_feat.reshape(B * Dm, 3 * H)).reshape(B, Dm, H)
    rel_in = pallas_bmm(sdp_domain.astype(jnp.float32), rel_in)      # [B, Dm2, H]
    Dm2 = sdp_domain.shape[1]
    # glue: batch re-ordering (tiny permutation matmul)
    order_f = order_mm.astype(jnp.float32)
    rel_in = (order_f @ rel_in.reshape(B, -1)).reshape(B, Dm2, H)

    # reason_with_rnn  (reference assumes order_mm sorts by sdp length, as here)
    seq_lens = jnp.sort(sdp_domain.astype(jnp.float32).sum((1, 2)))[::-1]
    ht0 = lstm_last_hidden(rel_in, seq_lens, params['lstm'])
    reason = (order_f.T @ ht0.reshape(B, -1)).reshape(B, H)

    aspect_output = pallas_linear(
        jnp.concatenate([reason, aspect_output], axis=-1),
        params['mlp_wt'], params['mlp_b'], relu=True)

    # h_out: group-max over the batch via batch_map
    keep_bm = (batch_map != 0).astype(jnp.float32).T[None]           # [1, B, M]
    h_out = pallas_masked_max(aspect_output[None], keep_bm)[0]       # [M, H]

    return h_out, aspect_h_pool


# --------------------------------------------------------------------------
# Deterministic parameter initialization (shapes follow the module __init__)
# --------------------------------------------------------------------------
def init_params(key, opt):
    H = opt['hidden_dim']
    heads = opt['heads']
    in_dim = opt['emb_dim'] + opt['pos_dim'] + opt['ner_dim']
    ks = iter(jax.random.split(key, 64))

    def lin(out_d, in_d):
        s = 1.0 / jnp.sqrt(jnp.asarray(in_d, jnp.float32))
        w = jax.random.uniform(next(ks), (out_d, in_d), jnp.float32, -s, s)
        b = jax.random.uniform(next(ks), (out_d,), jnp.float32, -s, s)
        return w, b

    emb = jax.random.uniform(next(ks), (opt['vocab_size'], opt['emb_dim']),
                             jnp.float32, -1.0, 1.0)
    emb = emb.at[0].set(0.0)                                   # padding_idx = 0

    params = dict(
        emb=emb,
        pos_emb=jax.random.normal(next(ks), (N_POS, opt['pos_dim']), jnp.float32),
        ner_emb=jax.random.normal(next(ks), (N_NER, opt['ner_dim']), jnp.float32),
        rel_emb=jax.random.normal(next(ks), (N_DEPREL, H), jnp.float32),
    )
    params['W_G_w'], params['W_G_b'] = lin(H, in_dim)          # input_W_G
    params['W_Q_w'], params['W_Q_b'] = lin(H, 2 * H)           # MultiHeadAttention.W_Q
    params['W_K_w'], params['W_K_b'] = lin(H, H)               # MultiHeadAttention.W_K

    layers = []
    sub_counts = []
    for _ in range(opt['num_layers']):
        sub_counts += [opt['sublayer_first'], opt['sublayer_second']]
    for n_sub in sub_counts:
        weights = [lin(H, H) for _ in range(heads * n_sub)]
        lw, lb = lin(H, H * heads * n_sub)
        layers.append(dict(weights=weights, lin_w=lw, lin_b=lb))
    params['layers'] = layers

    rp = [lin(H, 3 * H)]
    for _ in range(opt['mlp_layers'] - 1):
        rp.append(lin(H, H))
    params['relproj'] = rp
    params['mlp_w'], params['mlp_b'] = lin(H, 2 * H)

    RH = opt['rnn_hidden']
    s = 1.0 / jnp.sqrt(jnp.asarray(RH, jnp.float32))
    params['lstm'] = (
        jax.random.uniform(next(ks), (4 * RH, RH), jnp.float32, -s, s),   # weight_ih_l0
        jax.random.uniform(next(ks), (4 * RH, RH), jnp.float32, -s, s),   # weight_hh_l0
        jax.random.uniform(next(ks), (4 * RH,), jnp.float32, -s, s),      # bias_ih_l0
        jax.random.uniform(next(ks), (4 * RH,), jnp.float32, -s, s),      # bias_hh_l0
    )
    return params


def prepare_params(raw, opt):
    """Hoist all weight transposes / head splits / MXU-dtype casts / 2*b bias
    prep out of the forward pass.  Done once, before any kernel runs."""
    H = opt['hidden_dim']
    heads = opt['heads']
    d_k = H // heads

    def prep_lin(w, b):
        return (jnp.asarray(w, jnp.float32).T.astype(MXU_DTYPE),
                jnp.asarray(b, jnp.float32))

    def head_split(wt):      # wt:[H_in, H_out] -> [heads, H_in, d_k]
        return wt.reshape(H, heads, d_k).transpose(1, 0, 2)

    p = dict(emb=raw['emb'], pos_emb=raw['pos_emb'], ner_emb=raw['ner_emb'],
             rel_emb=raw['rel_emb'], lstm=raw['lstm'])
    p['W_G_wt'], p['W_G_b'] = prep_lin(raw['W_G_w'], raw['W_G_b'])

    # W_Q:[H, 2H] -> x-part (per-head panel) and rel-part (whole, used once)
    wq = jnp.asarray(raw['W_Q_w'], jnp.float32)
    p['W_Qx_heads'] = head_split(wq[:, :H].T).astype(MXU_DTYPE)      # [heads,H,d_k]
    p['W_Qrel_wt'] = wq[:, H:].T.astype(MXU_DTYPE)                   # [H,H]
    p['W_Q_b'] = jnp.asarray(raw['W_Q_b'], jnp.float32)

    wk_t = jnp.asarray(raw['W_K_w'], jnp.float32).T                  # [H,H]
    p['W_K_heads'] = head_split(wk_t).astype(MXU_DTYPE)              # [heads,H,d_k]
    p['W_K_bheads'] = jnp.asarray(raw['W_K_b'], jnp.float32).reshape(heads, 1, d_k)

    layers = []
    for lw_raw in raw['layers']:
        n_sub = len(lw_raw['weights']) // heads
        ws = jnp.stack([jnp.asarray(w, jnp.float32).T
                        for (w, _) in lw_raw['weights']])        # [heads*n_sub,H,H]
        bs = jnp.stack([2.0 * jnp.asarray(b, jnp.float32)
                        for (_, b) in lw_raw['weights']])        # [heads*n_sub,H]
        lin_wt = jnp.asarray(lw_raw['lin_w'], jnp.float32).T     # [heads*n_sub*H, H]
        layers.append(dict(
            gcn_w=ws.reshape(heads, n_sub, H, H).astype(MXU_DTYPE),
            gcn_b2=bs.reshape(heads, n_sub, 1, H),
            lin_w3=lin_wt.reshape(heads, n_sub, H, H).astype(MXU_DTYPE),
            lin_b=jnp.asarray(lw_raw['lin_b'], jnp.float32).reshape(1, H)))
    p['layers'] = layers

    p['relproj'] = [prep_lin(w, b) for (w, b) in raw['relproj']]
    p['mlp_wt'], p['mlp_b'] = prep_lin(raw['mlp_w'], raw['mlp_b'])
    return p


# --------------------------------------------------------------------------
# Main
# --------------------------------------------------------------------------
if __name__ == "__main__":
    opt = dict(vocab_size=50, emb_dim=16, pos_dim=8, ner_dim=8, hidden_dim=32,
               num_layers=1, heads=2, sublayer_first=2, sublayer_second=2,
               mlp_layers=2, rnn=False, rnn_hidden=32, rnn_layers=1,
               rnn_dropout=0.0, input_dropout=0.0, gcn_dropout=0.0,
               pooling='max', topn=0, cuda=False)

    B, L, Dm, M = 2, 8, 4, 2
    key = jax.random.PRNGKey(0)
    kks = jax.random.split(key, 16)
    params = prepare_params(init_params(kks[0], opt), opt)

    words = jax.random.randint(kks[1], (B, L), 1, opt['vocab_size'])
    words = words.at[1, L - 1].set(0)                       # one PAD token
    masks = jnp.zeros((B, L), jnp.int32)
    pos = jax.random.randint(kks[2], (B, L), 0, N_POS)
    ner = jax.random.randint(kks[3], (B, L), 0, N_NER)
    deprel = jax.random.randint(kks[4], (B, L), 0, N_DEPREL)
    subj_mask = jax.random.randint(kks[5], (B, L), 0, 2).at[:, 0:2].set(0)
    obj_mask = jax.random.randint(kks[6], (B, L), 0, 2).at[:, 2:4].set(0)

    adj = jax.random.bernoulli(kks[7], 0.5, (B, L, L)).astype(jnp.float32)
    adj = adj.at[:, 0, 1].set(1.0).at[:, 2, 3].set(1.0)

    domain = jax.random.bernoulli(kks[8], 0.4, (B, L, Dm)).astype(jnp.float32)
    domain_subj = jax.random.bernoulli(kks[9], 0.4, (B, L, Dm)).astype(jnp.float32)
    domain_obj = jax.random.bernoulli(kks[10], 0.4, (B, L, Dm)).astype(jnp.float32)
    for d in range(Dm):                                     # every domain column non-empty
        domain = domain.at[:, d, d].set(1.0)
        domain_subj = domain_subj.at[:, d, d].set(1.0)
        domain_obj = domain_obj.at[:, d, d].set(1.0)

    sdp_domain = jnp.zeros((B, Dm, Dm), jnp.float32)
    sdp_domain = sdp_domain.at[0, 0, 0].set(1.0).at[0, 1, 1].set(1.0).at[0, 2, 2].set(1.0)
    sdp_domain = sdp_domain.at[1, 0, 0].set(1.0).at[1, 1, 2].set(1.0)
    order_mm = jnp.eye(B, dtype=jnp.float32)                # already length-sorted
    batch_map = jnp.array([[1, 0], [1, 1]], jnp.int32)

    depmap = jnp.zeros((B, L, L), jnp.float32)              # unused in forward
    rel = jnp.zeros((B, L), jnp.int32)                      # unused in forward
    resrel = jnp.zeros((B, L), jnp.int32)                   # unused in forward
    sdp_mask = jnp.zeros((B, L), jnp.int32)                 # unused in forward

    inputs = (words, masks, pos, subj_mask, obj_mask, ner, depmap, adj, rel,
              resrel, deprel, domain, sdp_domain, domain_subj, domain_obj,
              order_mm, sdp_mask, batch_map)

    h_out, aspect_h_pool = gcn_relation_forward(params, inputs, opt)
    jax.block_until_ready((h_out, aspect_h_pool))
    assert h_out.shape == (M, opt['hidden_dim'])
    assert aspect_h_pool.shape == (B, opt['hidden_dim'])
    print("KERNEL_OK")
</pallas_src>

<mosaic_0001>
module attributes {stable_mosaic.version = 11 : i64} {
  func.func @_linear_kernel(%arg0: i32, %arg1: memref<16x32xf32, #tpu.memory_space<vmem>>, %arg2: memref<32x32xbf16, #tpu.memory_space<vmem>>, %arg3: memref<1x32xf32, #tpu.memory_space<vmem>>, %arg4: memref<16x32xf32, #tpu.memory_space<vmem>>) attributes {dimension_semantics = [#tpu.dimension_semantics<parallel>], iteration_bounds = array<i64: 1>, scalar_prefetch = 0 : i64, scratch_operands = 0 : i64, tpu.core_type = #tpu.core_type<tc>, window_params = [{transform_indices = @transform_0, window_bounds = array<i64: 16, 32>}, {pipeline_mode = #tpu.pipeline_mode<synchronous>, transform_indices = @transform_1, window_bounds = array<i64: 32, 32>}, {pipeline_mode = #tpu.pipeline_mode<synchronous>, transform_indices = @transform_2, window_bounds = array<i64: 1, 32>}, {transform_indices = @transform_3, window_bounds = array<i64: 16, 32>}]} {
    %c0 = arith.constant 0 : index
    %c0_0 = arith.constant 0 : index
    %0 = vector.load %arg1[%c0, %c0_0] : memref<16x32xf32, #tpu.memory_space<vmem>>, vector<16x32xf32>
    %1 = arith.truncf %0 : vector<16x32xf32> to vector<16x32xbf16>
    %c0_1 = arith.constant 0 : index
    %c0_2 = arith.constant 0 : index
    %2 = vector.load %arg2[%c0_1, %c0_2] : memref<32x32xbf16, #tpu.memory_space<vmem>>, vector<32x32xbf16>
    %cst = arith.constant dense<0.000000e+00> : vector<16x32xf32>
    %3 = tpu.matmul %1, %2, %cst {dimension_numbers = #tpu.dot_dimension_numbers<[1], [0], [0], [1], [0, 0, 1, 1], [], []>} : vector<16x32xbf16>, vector<32x32xbf16>, vector<16x32xf32> -> vector<16x32xf32>
    %c0_3 = arith.constant 0 : index
    %c0_4 = arith.constant 0 : index
    %4 = vector.load %arg3[%c0_3, %c0_4] : memref<1x32xf32, #tpu.memory_space<vmem>>, vector<1x32xf32>
    %5 = vector.broadcast %4 : vector<1x32xf32> to vector<16x32xf32>
    %6 = arith.addf %3, %5 : vector<16x32xf32>
    %c0_5 = arith.constant 0 : index
    %c0_6 = arith.constant 0 : index
    %7 = vector.load %arg4[%c0_5, %c0_6] : memref<16x32xf32, #tpu.memory_space<vmem>>, vector<16x32xf32>
    tpu.vector_store %arg4[%c0_5, %c0_6], %6 {strides = array<i32>} : memref<16x32xf32, #tpu.memory_space<vmem>>, vector<16x32xf32>,
    return
  }
  func.func @transform_0(%arg0: i32) -> (i32, i32) {
    %c0_i32 = arith.constant 0 : i32
    %c0_i32_0 = arith.constant 0 : i32
    return %arg0, %c0_i32 : i32, i32
  }
  func.func @transform_1(%arg0: i32) -> (i32, i32) {
    %c0_i32 = arith.constant 0 : i32
    %c0_i32_0 = arith.constant 0 : i32
    %c0_i32_1 = arith.constant 0 : i32
    return %c0_i32, %c0_i32_0 : i32, i32
  }
  func.func @transform_2(%arg0: i32) -> (i32, i32) {
    %c0_i32 = arith.constant 0 : i32
    %c0_i32_0 = arith.constant 0 : i32
    %c0_i32_1 = arith.constant 0 : i32
    return %c0_i32, %c0_i32_0 : i32, i32
  }
  func.func @transform_3(%arg0: i32) -> (i32, i32) {
    %c0_i32 = arith.constant 0 : i32
    %c0_i32_0 = arith.constant 0 : i32
    return %arg0, %c0_i32 : i32, i32
  }
}

</mosaic_0001>

<bundles_post_ra>
// kernel: tpu_custom_call.1
= control target key start
LH: loop header
LB: loop body
LE: loop exit
PB: predicated region body
PF: predicated region fallthrough
CT: control target
= control target key end

     0   :  { %8 = vsyncpa [#allocation3], 0  ;;  %s274_s0 = inlined_call_operand.hbm [shape: f32[16,32], index: 0, kind: input, shape index: {}]   ;;  %s275_s1 = inlined_call_operand.hbm [shape: bf16[32,32], index: 1, kind: input, shape index: {}]   ;;  %s276_s2 = inlined_call_operand.vmem [shape: f32[1,32], index: 2, kind: input, shape index: {}]   ;;  %s277_s3 = inlined_call_operand.hbm [shape: f32[16,32], index: 3, kind: output, shape index: {}]  }
   0x1   :  { %9 = vsyncpa [#allocation6], 0 }
   0x2   :  { %10 = vsyncpa [#allocation4], 0  ;;  %s227_s12 = smov [#allocation2]  }
   0x3   :  { %s16_s13 = sshll.u32 %s227_s12, 4  ;;  %s17_s13 = int_to_ptr.vmem [resolvable:$true] %s16_s13 }
   0x4   :  { %s169_s14 = scalar_lea.vmem %s17_s13, 256  ;;  %p174_p1 = scmp.lt.s32.totalorder %s17_s13, %s17_s13 }
   0x5   :  { %p170_p0 = scmp.ne.s32.totalorder %s17_s13, %s169_s14  ;;  %p175_p2 = scmp.lt.s32.totalorder %s169_s14, %s169_s14 }
   0x7   :  { %p176_p3 = por %p175_p2, %p174_p1 }
   0x9   :  { %p177_p4 = pnand %p176_p3, %p170_p0 }
   0xb   :  { %180 = shalt.err (!%p177_p4)
}
   0xc   :  { %s228_s15 = smov 128   ;;  %s229_s16 = smov 8  }
   0xd   :  { %22 = dma.hbm_to_vmem [thread:$0]  %s274_s0, 256, %s17_s13, [#allocation3], %s228_s15, %s228_s15, %s229_s16  }
   0xe   :  { %s230_s19 = smov [#allocation5]  }
   0xf   :  { %s28_s20 = sshll.u32 %s230_s19, 4  ;;  %s29_s20 = int_to_ptr.vmem [resolvable:$true] %s28_s20 }
  0x10   :  { %s189_s21 = scalar_lea.vmem %s29_s20, 256  ;;  %p194_p6 = scmp.lt.s32.totalorder %s29_s20, %s29_s20 }
  0x11   :  { %p190_p5 = scmp.ne.s32.totalorder %s29_s20, %s189_s21  ;;  %p195_p7 = scmp.lt.s32.totalorder %s189_s21, %s189_s21 }
  0x13   :  { %p196_p8 = por %p195_p7, %p194_p6 }
  0x15   :  { %p197_p9 = pnand %p196_p8, %p190_p5 }
  0x17   :  { %200 = shalt.err (!%p197_p9)
}
  0x18   :  { %s231_s22 = smov 64   ;;  %s232_s23 = smov 4  }
  0x19   :  { %34 = dma.hbm_to_vmem [thread:$0]  %s275_s1, 256, %s29_s20, [#allocation6], %s231_s22, %s231_s22, %s232_s23  }
  0x1a   :  { %221 = dma.done.wait [#allocation3], 256  }
  0x1b   :  { %222 = vsyncadd [#allocation3], 4294967040 }
  0x1c   :  { %223 = dma.done.wait [#allocation6], 256  }
  0x1d   :  { %224 = vsyncadd [#allocation6], 4294967040  ;;  %v233_v0 = vmov 0.0   ;;  %vm234_vm0 = vmmov 0   ;;  %v159_v1 = vld [vmem:[#allocation5 + $0x8] sm:$0xff]   ;;  %v160_v2 = vld [vmem:[#allocation5] sm:$0xff]  }
  0x1e   :  { %142 = vmatprep.subr.bf16.mxu0 %v233_v0  ;;  %146 = vmatprep.mubr.msk.bf16.mxu0 %vm234_vm0, %v233_v0  ;;  %v44_v3 = vld [vmem:[#allocation2] sm:$0xff]  ;;  %v45_v4 = vld [vmem:[#allocation2 + $0x8] sm:$0xff]  ;;  %vm70_vm1 = vcmask 261120   ;;  %s235_s26 = smov [#allocation7]  }
  0x1f   :  { %143 = vmatpush3.bf16.msra.mxu0 %v159_v1  ;;  %v46_v5 = vpack.c.bf16 %v45_v4, %v44_v3  ;;  %v135_v6 = vld [vmem:[%s276_s2] ss:$0 sm:$0xff]  ;;  %s122_s27 = sshll.u32 %s235_s26, 4  ;;  %s123_s27 = int_to_ptr.vmem [resolvable:$true] %s122_s27 }
  0x20   :  { %144 = vmatprep.subr.bf16.mxu0 %v233_v0  ;;  %s201_s28 = scalar_lea.vmem %s123_s27, 256  ;;  %p206_p11 = scmp.lt.s32.totalorder %s123_s27, %s123_s27 }
  0x21   :  { %p202_p10 = scmp.ne.s32.totalorder %s123_s27, %s201_s28  ;;  %p207_p12 = scmp.lt.s32.totalorder %s201_s28, %s201_s28 }
  0x23   :  { %145 = vmatpush3.bf16.msra.mxu0 %v160_v2  ;;  %p208_p13 = por %p207_p12, %p206_p11 }
  0x25   :  { %p209_p0 = pnand %p208_p13, %p202_p10 }
  0x26   :  { %147 = vmatmul.mubr.msk.bf16.vlgmr.msra.gmra.mxu0 %vm70_vm1, %v46_v5 }
  0xe6   :  { %v108_v7 = vpop.f32.mrf.mxu0 }
  0xe7   :  { %v109_v8 = vadd.f32 %v135_v6, %v108_v7 }
  0xe8   :  { %v148_v9 = vpop.f32.mrf.mxu0 }
  0xe9   :  { %115 = vst.msk [vmem:[#allocation7] sm:$0xff] %vm70_vm1, %v109_v8 }
  0xea   :  { %v111_v10 = vpop.f32.mrf.mxu0 }
  0xeb   :  { %v112_v11 = vadd.f32 %v135_v6, %v111_v10 }
  0xec   :  { %v149_v12 = vpop.f32.mrf.mxu0 }
  0xed   :  { %116 = vst.msk [vmem:[#allocation7 + $0x8] sm:$0xff] %vm70_vm1, %v112_v11 }
  0xee   :  { %212 = shalt.err (!%p209_p0)
}
  0xef   :  { %128 = dma.vmem_to_hbm [thread:$0]  %s123_s27, 256, %s277_s3, [#allocation4], %s228_s15, %s228_s15, %s229_s16  }
  0xf0   :  { %225 = dma.done.wait [#allocation4], 256  }
  0xf1   :  { %226 = vsyncadd [#allocation4], 4294967040 }
  0xf2   :  { %132 = vsyncpa [#allocation3], 1 }
  0xf3   :  { %133 = vsyncpa [#allocation6], 1 }
  0xf4   :  { %134 = vsyncpa [#allocation4], 1 }

</bundles_post_ra>
